<compile_context>
chip_gen: v6e
topology: v6e:2x2x1
jax: 0.10.0
libtpu: 0.0.40
codegen_flags: <defaults>
</compile_context>

<pallas_src>
import math

import jax
import jax.numpy as jnp
from jax import lax
from jax.experimental import pallas as pl
from jax.experimental.pallas import tpu as pltpu


def _embedding_kernel(x_ref, w_ref, o_ref):
    # x_ref: (C, TS)   -- contraction dim C on sublanes, seq tile on lanes
    # w_ref: (C, TE)   -- contraction dim C on sublanes, emb tile on lanes
    # o_ref: (TS, TE)
    # Contract dim 0 of both operands: out[s, e] = sum_c x[c, s] * w[c, e].
    o_ref[...] = lax.dot_general(
        x_ref[...],
        w_ref[...],
        dimension_numbers=(((0,), (0,)), ((), ())),
        preferred_element_type=jnp.float32,
    ).astype(o_ref.dtype)


def _pick_tile(dim, candidates=(512, 256, 128)):
    """Largest candidate tile that exactly divides `dim`; else the full dim.

    Candidates are multiples of 128 (lane-dense stores, aligned loads) and capped
    at 512 so double-buffered tiles fit default scoped VMEM on all generations.
    A full-dim block is always legal per the (8, 128) BlockSpec rule.
    """
    for t in candidates:
        if dim >= t and dim % t == 0:
            return t
    return dim


def embedding_forward(inputs, weight):
    """inputs: (B, in_size, seq_len) float; weight: (in_size, emb).

    Returns (B, seq_len, emb) float32, matching the torch cat of per-step bmm's.
    """
    inputs = inputs.astype(jnp.float32)  # mirrors .float() in the torch code
    weight = weight.astype(jnp.float32)
    B, C, S = inputs.shape
    E = weight.shape[1]

    ts = _pick_tile(S)
    te = _pick_tile(E)
    grid = (B, S // ts, E // te)

    itemsize = 4  # f32
    cost = pl.CostEstimate(
        flops=2 * B * S * C * E,
        transcendentals=0,
        bytes_accessed=(B * C * S + C * E + B * S * E) * itemsize,
    )

    return pl.pallas_call(
        _embedding_kernel,
        out_shape=jax.ShapeDtypeStruct((B, S, E), jnp.float32),
        grid=grid,
        in_specs=[
            # x stays in its native (B, C, S) layout: no wrapper transpose pass.
            # Its block index is constant over the inner j axis -> no re-DMA there.
            pl.BlockSpec((None, C, ts), lambda b, i, j: (b, 0, i)),
            # Full-C weight tile; depends only on j.
            pl.BlockSpec((C, te), lambda b, i, j: (0, j)),
        ],
        out_specs=pl.BlockSpec((None, ts, te), lambda b, i, j: (b, i, j)),
        compiler_params=pltpu.CompilerParams(
            # No reduction grid axis (C is a single block) -> everything parallel,
            # letting megacore / 2 TCs (v7x) shard the grid.
            dimension_semantics=("parallel", "parallel", "parallel"),
        ),
        cost_estimate=cost,
    )(inputs, weight)


def init_embedding_params(key, in_size, embedding_size):
    # torch: uniform_(-1/sqrt(E), 1/sqrt(E))
    bound = 1.0 / math.sqrt(embedding_size)
    return jax.random.uniform(
        key, (in_size, embedding_size), dtype=jnp.float32,
        minval=-bound, maxval=bound,
    )


if __name__ == "__main__":
    batch = 2
    in_size = 4
    seq_len = 8
    embedding_size = 32

    key = jax.random.PRNGKey(0)
    k_w, k_x = jax.random.split(key)

    weight = init_embedding_params(k_w, in_size, embedding_size)
    inputs = jax.random.normal(k_x, (batch, in_size, seq_len), dtype=jnp.float32)

    out = embedding_forward(inputs, weight)
    out = jax.block_until_ready(out)

    # reference check (pure JAX): out[b, s, :] = inputs[b, :, s] @ W
    ref = jnp.einsum("bcs,ce->bse", inputs, weight)
    assert out.shape == (batch, seq_len, embedding_size)
    assert jnp.allclose(out, ref, atol=1e-5, rtol=1e-5)

    print("KERNEL_OK")
</pallas_src>

<mosaic_0001>
module attributes {stable_mosaic.version = 11 : i64} {
  func.func @_embedding_kernel(%arg0: i32, %arg1: i32, %arg2: i32, %arg3: memref<1x4x8xf32, #tpu.memory_space<vmem>>, %arg4: memref<4x32xf32, #tpu.memory_space<vmem>>, %arg5: memref<1x8x32xf32, #tpu.memory_space<vmem>>) attributes {dimension_semantics = [#tpu.dimension_semantics<parallel>, #tpu.dimension_semantics<parallel>, #tpu.dimension_semantics<parallel>], iteration_bounds = array<i64: 2, 1, 1>, scalar_prefetch = 0 : i64, scratch_operands = 0 : i64, tpu.core_type = #tpu.core_type<tc>, window_params = [{transform_indices = @transform_0, window_bounds = array<i64: 1, 4, 8>}, {transform_indices = @transform_1, window_bounds = array<i64: 4, 32>}, {transform_indices = @transform_2, window_bounds = array<i64: 1, 8, 32>}]} {
    %c0 = arith.constant 0 : index
    %c0_0 = arith.constant 0 : index
    %c0_1 = arith.constant 0 : index
    %0 = vector.load %arg3[%c0, %c0_0, %c0_1] : memref<1x4x8xf32, #tpu.memory_space<vmem>>, vector<1x4x8xf32>
    %1 = vector.shape_cast %0 : vector<1x4x8xf32> to vector<4x8xf32>
    %c0_2 = arith.constant 0 : index
    %c0_3 = arith.constant 0 : index
    %2 = vector.load %arg4[%c0_2, %c0_3] : memref<4x32xf32, #tpu.memory_space<vmem>>, vector<4x32xf32>
    %cst = arith.constant dense<0.000000e+00> : vector<8x32xf32>
    %3 = tpu.matmul %1, %2, %cst {dimension_numbers = #tpu.dot_dimension_numbers<[0], [0], [1], [1], [0, 1, 1, 1], [], []>} : vector<4x8xf32>, vector<4x32xf32>, vector<8x32xf32> -> vector<8x32xf32>
    %c0_4 = arith.constant 0 : index
    %c0_5 = arith.constant 0 : index
    %c0_6 = arith.constant 0 : index
    %4 = vector.load %arg5[%c0_4, %c0_5, %c0_6] : memref<1x8x32xf32, #tpu.memory_space<vmem>>, vector<1x8x32xf32>
    %5 = vector.shape_cast %4 : vector<1x8x32xf32> to vector<8x32xf32>
    %6 = vector.shape_cast %3 : vector<8x32xf32> to vector<1x8x32xf32>
    tpu.vector_store %arg5[%c0_4, %c0_5, %c0_6], %6 {strides = array<i32>} : memref<1x8x32xf32, #tpu.memory_space<vmem>>, vector<1x8x32xf32>,
    return
  }
  func.func @transform_0(%arg0: i32, %arg1: i32, %arg2: i32) -> (i32, i32, i32) {
    %c0_i32 = arith.constant 0 : i32
    %c0_i32_0 = arith.constant 0 : i32
    return %arg0, %c0_i32, %arg1 : i32, i32, i32
  }
  func.func @transform_1(%arg0: i32, %arg1: i32, %arg2: i32) -> (i32, i32) {
    %c0_i32 = arith.constant 0 : i32
    %c0_i32_0 = arith.constant 0 : i32
    return %c0_i32, %arg2 : i32, i32
  }
  func.func @transform_2(%arg0: i32, %arg1: i32, %arg2: i32) -> (i32, i32, i32) {
    %c0_i32 = arith.constant 0 : i32
    return %arg0, %arg1, %arg2 : i32, i32, i32
  }
}

</mosaic_0001>

<bundles_post_ra>
// kernel: tpu_custom_call.1
= control target key start
LH: loop header
LB: loop body
LE: loop exit
PB: predicated region body
PF: predicated region fallthrough
CT: control target
= control target key end

     0   :  { %7 = vsyncpa [#allocation3], 0  ;;  %s864_s0 = inlined_call_operand.hbm [shape: f32[2,4,8], index: 0, kind: input, shape index: {}]   ;;  %s865_s1 = inlined_call_operand.hbm [shape: f32[4,32], index: 1, kind: input, shape index: {}]   ;;  %s866_s2 = inlined_call_operand.hbm [shape: f32[2,8,32], index: 2, kind: output, shape index: {}]  }
   0x1   :  { %9 = vsyncpa [#allocation3 + $0x1], 0 }
   0x2   :  { %10 = vsyncpa [#allocation6], 0 }
   0x3   :  { %11 = vsyncpa [#allocation4], 0 }
   0x4   :  { %13 = vsyncpa [#allocation4 + $0x1], 0  ;;  %s690_s9 = smov 0   ;;  %s692_s10 = smov 0  }
   0x5   :  { %s694_s11 = smov 0   ;;  %s696_s12 = smov 0  }
   0x6   :  { %s698_s13 = smov 0   ;;  %s700_s14 = smov 0  }
   0x7 LB: > { %s431_s15 = sadd.s32 4294967295, %s668_s14   ;;  %s432_s16 = sadd.s32 4294967294, %s668_s14   ;;  %s668_s14 = sphi %s700_s14, %s19_s14   ;;  %s664_s13 = sphi %s698_s13, %s883_s13   ;;  %s660_s12 = sphi %s696_s12, %s882_s12   ;;  %s656_s11 = sphi %s694_s11, %s881_s11   ;;  %s652_s10 = sphi %s692_s10, %s880_s10   ;;  %s648_s9 = sphi %s690_s9, %s879_s9  }
   0x8   : > { %p60_p0 = scmp.ne.s32.totalorder %s652_s10, %s648_s9  ;;  %p724_p1 = scmp.eq.s32.totalorder %s431_s15, 0 }
   0x9   : > { %p728_p2 = scmp.eq.s32.totalorder %s431_s15, 1  ;;  %p120_p3 = scmp.eq.s32.totalorder %s432_s16, 1 }
   0xa   : > { %p734_p4 = por %p724_p1, %p60_p0  ;;  %p433_p5 = scmp.ge.s32.totalorder %s668_s14, 1 }
   0xb   : > { %p739_p6 = por %p120_p3, %p60_p0  ;;  %p127_p7 = scmp.lt.s32.totalorder %s668_s14, 3 }
   0xc   : > { %s870_s19 = scalar_select %p734_p4, 1, 0 }
   0xd   : > { %s871_s20 = scalar_select %p739_p6, 1, 0 }
   0xe   : > { %p744_p8 = pnand %p433_p5, %p127_p7  ;;  %s670_s22 = smov [#allocation5]  }
   0xf   : > { %s142_s23 = sshll.u32 %s670_s22, 4  ;;  %s38_s25 = sadd.s32 1, %s664_s13  ;;  %s143_s23 = int_to_ptr.vmem [resolvable:$true] %s142_s23 }
  0x10   : > { %p463_p10 = pneg %p744_p8  ;;  %s47_s26 = sadd.s32 1, %s656_s11 }
  0x11   : > { %p40_p12 = scmp.ge.s32.totalorder %s38_s25, 2  ;;  %s541_s27 = scalar_lea.vmem %s143_s23, 64 }
  0x12   : > { %p753_p11 = pnand %p463_p10, %p724_p1  ;;  %p542_p0 = scmp.ne.s32.totalorder %s143_s23, %s541_s27 }
  0x13   : > { %p549_p7 = scmp.lt.s32.totalorder %s143_s23, %s143_s23  ;;  %p550_p6 = scmp.lt.s32.totalorder %s541_s27, %s541_s27 }
  0x14   : > { %p532_p13 = pneg %p753_p11 }
  0x15   : > { %p551_p9 = por %p550_p6, %p549_p7 }
  0x16   : > { %p544_p3 = pnand %p542_p0, %p532_p13 }
  0x18   : > { %p545_p5 = pneg %p544_p3 }
  0x1a   : > { %p552_p4 = pnand %p551_p9, %p545_p5 }
  0x1c   : > { %555 = shalt.err (!%p552_p4)
}
  0x1d   : > { %466 = dma.hbm_to_vmem [thread:$0]  (!%p753_p11), %s865_s1, 64, %s143_s23, [#allocation6]  }
  0x1e   : > { %s885_s25 = smov (%p40_p12, %s38_s25), 0  ;;  %p54_p6 = scmp.ne.s32.totalorder %s656_s11, %s652_s10 }
  0x1f   : > { %p55_p4 = scmp.eq.s32.totalorder %s668_s14, 0  ;;  %s42_s30 = ssub.s32 %s664_s13, %s885_s25 }
  0x20   : > { %p476_p9 = scmp.lt.s32.totalorder %s668_s14, 2  ;;  %p45_p10 = scmp.eq.s32.totalorder %s42_s30, 0 }
  0x21   : > { %p56_p13 = por %p55_p4, %p54_p6  ;;  %p776_p0 = por %p728_p2, %p54_p6 }
  0x22   : > { %s153_s4 = sand.u32 1, %s656_s11   ;;  %s437_s7 = sshll.u32 %s664_s13, 6 }
  0x23   : > { %s782_s5 = scalar_select %p45_p10, %s656_s11, %s47_s26  }
  0x24   : > { %s436_s6 = sshll.u32 %s153_s4, 2  ;;  %s163_s16 = scalar_lea.hbm %s864_s0, %s437_s7 }
  0x25   : > { %s157_s22 = scalar_lea.vmem [#allocation2], %s436_s6  ;;  %p788_p11 = pnand %p476_p9, %p56_p13 }
  0x26   : > { %s165_s23 = sshll.u32 %s157_s22, 4  ;;  %s154_s18 = scalar_lea.sflag [#allocation3], %s153_s4  ;;  %s166_s23 = int_to_ptr.vmem [resolvable:$true] %s165_s23 }
  0x27   : > { %p558_p2 = pneg %p788_p11  ;;  %s569_s27 = scalar_lea.vmem %s166_s23, 64 }
  0x28   : > { %p570_p12 = scmp.ne.s32.totalorder %s166_s23, %s569_s27  ;;  %s671_s26 = smov [#allocation2]  }
  0x29   : > { %s574_s28 = sshll.u32 %s671_s26, 4  ;;  %s575_s28 = int_to_ptr.vmem [resolvable:$false] %s574_s28 }
  0x2a   : > { %p572_p3 = pnand %p570_p12, %p558_p2  ;;  %s576_s29 = scalar_lea.vmem %s575_s28, 128 }
  0x2b   : > { %p577_p7 = scmp.lt.s32.totalorder %s166_s23, %s575_s28  ;;  %p578_p6 = scmp.lt.s32.totalorder %s576_s29, %s569_s27 }
  0x2c   : > { %p573_p5 = pneg %p572_p3 }
  0x2d   : > { %p579_p4 = por %p578_p6, %p577_p7 }
  0x2f   : > { %p580_p10 = pnand %p579_p4, %p573_p5 }
  0x31   : > { %583 = shalt.err (!%p580_p10)
}
  0x32   : > { %470 = dma.hbm_to_vmem [thread:$0]  (!%p788_p11), %s163_s16, 64, %s166_s23, %s154_s18  }
  0x33   : > { %174 = sbr.rel (%p744_p8) target bundleno = 393 (0x189), region = 28  ;;  %s799_s30 = sand.u32 (!%p744_p8), 1, %s652_s10  }
  0x34   : > { %s439_s4 = sshll.u32 (!%p744_p8), %s799_s30, 2  ;;  %s177_s6 = scalar_lea.sflag (!%p744_p8), [#allocation3], %s799_s30 }
  0x35   : > { %s180_s7 = scalar_lea.vmem (!%p744_p8), [#allocation2], %s439_s4  ;;  %p876_p9 = scmp.ne.s32.totalorder (!%p744_p8), %s870_s19, 0 }
  0x38   : > { %635 = dma.done.wait (%p876_p9), %s177_s6, 64  }
  0x39   : > { %637 = vsyncadd (%p876_p9), %s177_s6, 4294967232 }
  0x3a   : > { %639 = dma.done.wait (%p724_p1), [#allocation6], 64  }
  0x3b   : > { %641 = vsyncadd (%p724_p1), [#allocation6], 4294967232  ;;  %v672_v0 = vmov 0.0   ;;  %vm673_vm0 = vmmov 0   ;;  %vm243_vm1 = vcmask 1043456   ;;  %vm239_vm2 = vcmask 31744  }
  0x3c   : > { %450 = vmatprep.subr.mxu0 %v672_v0  ;;  %452 = vmatprep.mubr.msk.f32.mxu0 %vm673_vm0, %v672_v0  ;;  %v205_v1 = vld [vmem:[%s180_s7] sm:$0xf]  ;;  %v206_v2 = vld [vmem:[#allocation5] sm:$0xf]  ;;  %s441_s19 = sshll.u32 %s799_s30, 3  ;;  %s445_s21 = sshll.u32 %s660_s12, 7 }
  0x3d   : > { %207 = vxpose.xlu0.b32.start.end [1/1] (short) (narrow) %v205_v1, 8  ;;  %451 = vmatpush3.msk.msra.mxu0 %vm243_vm1, %v206_v2  ;;  %s204_s17 = scalar_lea.vmem [#allocation7], %s441_s19  ;;  %vm317_vm3 = vcmask 261120   ;;  %s816_s22 = scalar_lea.hbm %s866_s2, %s445_s21 }
  0x3e   : > { %s335_s8 = sshll.u32 %s204_s17, 4  ;;  %s320_s23 = scalar_lea.sflag [#allocation4], %s799_s30  ;;  %s818_s8 = int_to_ptr.vmem [resolvable:$true] %s335_s8 }
  0x3f   : > { %s584_s24 = scalar_lea.vmem %s818_s8, 128  ;;  %s674_s12 = smov [#allocation7]  }
  0x40   : > { %p585_p1 = scmp.ne.s32.totalorder %s818_s8, %s584_s24  ;;  %s588_s18 = sshll.u32 %s674_s12, 4  ;;  %s589_s18 = int_to_ptr.vmem [resolvable:$false] %s588_s18 }
  0x41   : > { %s590_s27 = scalar_lea.vmem %s589_s18, 256  ;;  %p591_p11 = scmp.lt.s32.totalorder %s818_s8, %s589_s18 }
  0x42   : > { %p586_p8 = pnand %p585_p1, %p776_p0  ;;  %p592_p2 = scmp.lt.s32.totalorder %s590_s27, %s584_s24 }
  0x44   : > { %p587_p13 = pneg %p586_p8  ;;  %p593_p12 = por %p592_p2, %p591_p11 }
  0x46   : > { %p594_p3 = pnand %p593_p12, %p587_p13 }
  0xb9   : > { %v223_v3 = vpop.trf.xlu0 }
  0xba   : > { %453 = vmatmul.mubr.msk.f32.vlgmr.msra.gmra.mxu0 %vm239_vm2, %v223_v3 }
 0x17a   : > { %v313_v4 = vpop.f32.mrf.mxu0 }
 0x17b   : > { %318 = vst.msk [vmem:[%s204_s17] sm:$0xff] %vm317_vm3, %v313_v4 }
 0x17c   : > { %v454_v5 = vpop.f32.mrf.mxu0 }
 0x17d   : > { %597 = shalt.err (!%p594_p3)
}
 0x17e   : > { %s598_s26 = scalar_lea.hbm %s816_s22, 128  ;;  %s602_s30 = scalar_lea.hbm %s866_s2, 256 }
 0x17f   : > { %p599_p5 = scmp.ne.s32.totalorder %s816_s22, %s598_s26  ;;  %p603_p4 = scmp.lt.s32.totalorder %s816_s22, %s866_s2 }
 0x180   : > { %p604_p10 = scmp.lt.s32.totalorder %s602_s30, %s598_s26 }
 0x181   : > { %p600_p7 = pnand %p599_p5, %p776_p0 }
 0x182   : > { %p605_p9 = por %p604_p10, %p603_p4 }
 0x183   : > { %p601_p6 = pneg %p600_p7 }
 0x185   : > { %p606_p1 = pnand %p605_p9, %p601_p6 }
 0x187   : > { %609 = shalt.err (!%p606_p1)
}
 0x188   : > { %461 = dma.vmem_to_hbm [thread:$0]  (%p776_p0), %s818_s8, 128, %s816_s22, %s320_s23  }
 0x189 PF: > { %s347_s7 = sand.u32 1, %s648_s9   ;;  %p877_p8 = scmp.ne.s32.totalorder %s871_s20, 0 }
 0x18a   : > { %p878_p13 = scmp.ge.s32.totalorder %s668_s14, 2  ;;  %s348_s19 = scalar_lea.sflag [#allocation4], %s347_s7 }
 0x18c   : > { %p472_p11 = pnand %p878_p13, %p877_p8 }
 0x18e   : > { %p473_p2 = pneg %p472_p11 }
 0x190   : > { %643 = dma.done.wait (%p473_p2), %s348_s19, 128  }
 0x191   : > { %645 = vsyncadd (%p473_p2), %s348_s19, 4294967168  ;;  %s19_s14 = sadd.s32 1, %s668_s14   ;;  %s879_s9 = smov %s652_s10 }
 0x192   : > { %p16_p12 = scmp.ge.s32.totalorder %s19_s14, 4   ;;  %s880_s10 = smov %s656_s11 }
 0x193   : > { %s881_s11 = smov %s782_s5  ;;  %s882_s12 = smov %s664_s13 }
 0x194   : > { %s883_s13 = smov %s885_s25  ;;  %18 = sbr.rel (!%p16_p12) target bundleno = 7 (0x7), region = 78 }
 0x199   :  { %353 = vsyncpa [#allocation3], 1 }
 0x19a   :  { %355 = vsyncpa [#allocation3 + $0x1], 1 }
 0x19b   :  { %356 = vsyncpa [#allocation6], 1 }
 0x19c   :  { %357 = vsyncpa [#allocation4], 1 }
 0x19d   :  { %359 = vsyncpa [#allocation4 + $0x1], 1 }

</bundles_post_ra>
